<compile_context>
chip_gen: v7x
topology: tpu7x:2x2x1
jax: 0.10.0
libtpu: 0.0.40
codegen_flags: <defaults>
</compile_context>

<pallas_src>
import functools

import jax
import jax.numpy as jnp
from jax import lax
from jax.experimental import pallas as pl
from jax.experimental.pallas import tpu as pltpu

EPS = 1e-5
N_OUT = 2          # true number of classes
OUT_PAD = 8        # HBM output width (block last dim == full array dim -> legal)


def _max_tile_and_vmem_limit():
    """Per-generation batch-tile cap and scoped-VMEM limit.

    Per-step VMEM footprint is ~3 KiB/row (lane-padded x/out double buffers
    plus the two hidden intermediates):
      tb=4096 -> ~13 MiB, tb=8192 -> ~26 MiB.
    v6e/v7x get 8192-row tiles under a 48 MiB scoped limit (v7x physical VMEM
    is 64 MiB, so leave headroom); v5e / unknown chips get 4096 rows under a
    32 MiB limit (v5e's default scoped limit is only 16 MiB).
    """
    kind = ""
    try:
        kind = jax.devices()[0].device_kind.lower()
    except Exception:
        pass
    if "v6" in kind or "v7" in kind:
        return 8192, 48 * 1024 * 1024
    return 4096, 32 * 1024 * 1024


# ----------------------------------------------------------------------------
# Kernel: one batch tile per grid step.  Weights/biases are resident in VMEM.
# ----------------------------------------------------------------------------
def bcw_dnn_kernel(x_ref, w1_ref, b1_ref, w2_ref, b2_ref, w3_ref, b3_ref, out_ref):
    x = x_ref[...]                                                   # (TB, 30)

    # fc1 + folded bn1 + relu   (dropout1 is identity in eval mode)
    h = jnp.dot(x, w1_ref[...], preferred_element_type=jnp.float32) + b1_ref[...]
    h = jnp.maximum(h, 0.0)                                          # (TB, 64)

    # fc2 + folded bn2 + relu   (dropout2 is identity in eval mode)
    h = jnp.dot(h, w2_ref[...], preferred_element_type=jnp.float32) + b2_ref[...]
    h = jnp.maximum(h, 0.0)                                          # (TB, 32)

    # fc3 (zero-padded from 2 to 8 output columns)
    out_ref[...] = (
        jnp.dot(h, w3_ref[...], preferred_element_type=jnp.float32) + b3_ref[...]
    )                                                                # (TB, 8)


# ----------------------------------------------------------------------------
# Parameter preparation: fold eval-mode BatchNorm into the preceding Linear,
# and pad fc3 from 2 to OUT_PAD output columns.  Call ONCE at load time.
# ----------------------------------------------------------------------------
def fold_params(p):
    s1 = p["g1"] * lax.rsqrt(p["v1"] + EPS)                # (1, 64)
    w1f = p["w1"] * s1                                     # (30, 64)
    b1f = (p["b1"] - p["m1"]) * s1 + p["be1"]              # (1, 64)

    s2 = p["g2"] * lax.rsqrt(p["v2"] + EPS)                # (1, 32)
    w2f = p["w2"] * s2                                     # (64, 32)
    b2f = (p["b2"] - p["m2"]) * s2 + p["be2"]              # (1, 32)

    w3p = jnp.pad(p["w3"], ((0, 0), (0, OUT_PAD - p["w3"].shape[1])))  # (32, 8)
    b3p = jnp.pad(p["b3"], ((0, 0), (0, OUT_PAD - p["b3"].shape[1])))  # (1, 8)
    return w1f, b1f, w2f, b2f, w3p, b3p


# ----------------------------------------------------------------------------
# Wrapper: batch-parallel grid, ragged last block handled by Pallas (no pad).
# ----------------------------------------------------------------------------
@functools.partial(jax.jit, static_argnames=("tb", "vmem_limit"))
def _bcw_dnn_call(x, w1f, b1f, w2f, b2f, w3p, b3p, *, tb, vmem_limit):
    B, F_in = x.shape
    grid = (pl.cdiv(B, tb),)
    const = lambda i: (0, 0)     # resident blocks (same block every grid step)

    out = pl.pallas_call(
        bcw_dnn_kernel,
        out_shape=jax.ShapeDtypeStruct((B, OUT_PAD), jnp.float32),
        grid=grid,
        in_specs=[
            pl.BlockSpec((tb, F_in), lambda i: (i, 0)),              # x stream
            pl.BlockSpec(w1f.shape, const),
            pl.BlockSpec(b1f.shape, const),
            pl.BlockSpec(w2f.shape, const),
            pl.BlockSpec(b2f.shape, const),
            pl.BlockSpec(w3p.shape, const),
            pl.BlockSpec(b3p.shape, const),
        ],
        out_specs=pl.BlockSpec((tb, OUT_PAD), lambda i: (i, 0)),
        compiler_params=pltpu.CompilerParams(
            dimension_semantics=("parallel",),     # dual-TC sharding on v7x
            vmem_limit_bytes=vmem_limit,
        ),
    )(x, w1f, b1f, w2f, b2f, w3p, b3p)

    return out[:, :N_OUT]


def bcw_dnn_forward(x, folded_params):
    """Forward pass.  `folded_params` is the tuple returned by fold_params()."""
    B = x.shape[0]
    max_tb, vmem_limit = _max_tile_and_vmem_limit()
    # Small batch: one block covering the whole batch (block dim == array dim,
    # always legal).  Large batch: max_tb-row tiles, ragged last block.
    tb = B if B <= max_tb else max_tb
    return _bcw_dnn_call(x, *folded_params, tb=tb, vmem_limit=vmem_limit)


# ----------------------------------------------------------------------------
# Deterministic synthetic parameters matching BCWDNN's shapes (PyTorch-style).
# ----------------------------------------------------------------------------
def init_params(key):
    ks = jax.random.split(key, 12)

    def linear(kw, kb, fan_in, fan_out):
        bound = 1.0 / jnp.sqrt(fan_in)
        w = jax.random.uniform(kw, (fan_in, fan_out), jnp.float32, -bound, bound)
        b = jax.random.uniform(kb, (1, fan_out), jnp.float32, -bound, bound)
        return w, b

    w1, b1 = linear(ks[0], ks[1], 30, 64)
    w2, b2 = linear(ks[2], ks[3], 64, 32)
    w3, b3 = linear(ks[4], ks[5], 32, 2)

    def bn(kg, kb, km, kv, n):
        g = jax.random.uniform(kg, (1, n), jnp.float32, 0.8, 1.2)
        be = jax.random.uniform(kb, (1, n), jnp.float32, -0.1, 0.1)
        m = jax.random.uniform(km, (1, n), jnp.float32, -0.2, 0.2)
        v = jax.random.uniform(kv, (1, n), jnp.float32, 0.5, 1.5)
        return g, be, m, v

    g1, be1, m1, v1 = bn(ks[6], ks[7], ks[8], ks[9], 64)
    g2, be2, m2, v2 = bn(ks[10], ks[11], ks[6], ks[7], 32)

    return dict(
        w1=w1, b1=b1, g1=g1, be1=be1, m1=m1, v1=v1,
        w2=w2, b2=b2, g2=g2, be2=be2, m2=m2, v2=v2,
        w3=w3, b3=b3,
    )


def reference_forward(x, p):
    """Pure-JAX reference of the eval-mode forward pass (unfolded BN)."""
    h = x @ p["w1"] + p["b1"]
    h = (h - p["m1"]) * lax.rsqrt(p["v1"] + EPS) * p["g1"] + p["be1"]
    h = jnp.maximum(h, 0.0)
    h = h @ p["w2"] + p["b2"]
    h = (h - p["m2"]) * lax.rsqrt(p["v2"] + EPS) * p["g2"] + p["be2"]
    h = jnp.maximum(h, 0.0)
    return h @ p["w3"] + p["b3"]


if __name__ == "__main__":
    key = jax.random.PRNGKey(0)
    k_x, k_p = jax.random.split(key)

    B, IN = 8, 30                       # small batch of BCW feature vectors
    x = jax.random.normal(k_x, (B, IN), dtype=jnp.float32)
    params = init_params(k_p)

    folded = fold_params(params)        # one-time BN folding (load time, not per call)

    out = bcw_dnn_forward(x, folded)
    out = jax.block_until_ready(out)

    ref = reference_forward(x, params)
    assert out.shape == (B, 2)
    assert jnp.allclose(out, ref, atol=1e-4, rtol=1e-4), "Pallas output mismatch"

    print("KERNEL_OK")
</pallas_src>

<mosaic_0001>
module attributes {stable_mosaic.version = 11 : i64} {
  func.func @bcw_dnn_kernel(%arg0: i32, %arg1: memref<8x30xf32, #tpu.memory_space<vmem>>, %arg2: memref<30x64xf32, #tpu.memory_space<vmem>>, %arg3: memref<1x64xf32, #tpu.memory_space<vmem>>, %arg4: memref<64x32xf32, #tpu.memory_space<vmem>>, %arg5: memref<1x32xf32, #tpu.memory_space<vmem>>, %arg6: memref<32x8xf32, #tpu.memory_space<vmem>>, %arg7: memref<1x8xf32, #tpu.memory_space<vmem>>, %arg8: memref<8x8xf32, #tpu.memory_space<vmem>>) attributes {dimension_semantics = [#tpu.dimension_semantics<parallel>], iteration_bounds = array<i64: 1>, scalar_prefetch = 0 : i64, scratch_operands = 0 : i64, tpu.core_type = #tpu.core_type<tc>, window_params = [{transform_indices = @transform_0, window_bounds = array<i64: 8, 30>}, {pipeline_mode = #tpu.pipeline_mode<synchronous>, transform_indices = @transform_1, window_bounds = array<i64: 30, 64>}, {pipeline_mode = #tpu.pipeline_mode<synchronous>, transform_indices = @transform_2, window_bounds = array<i64: 1, 64>}, {pipeline_mode = #tpu.pipeline_mode<synchronous>, transform_indices = @transform_3, window_bounds = array<i64: 64, 32>}, {pipeline_mode = #tpu.pipeline_mode<synchronous>, transform_indices = @transform_4, window_bounds = array<i64: 1, 32>}, {pipeline_mode = #tpu.pipeline_mode<synchronous>, transform_indices = @transform_5, window_bounds = array<i64: 32, 8>}, {pipeline_mode = #tpu.pipeline_mode<synchronous>, transform_indices = @transform_6, window_bounds = array<i64: 1, 8>}, {transform_indices = @transform_7, window_bounds = array<i64: 8, 8>}]} {
    %c0 = arith.constant 0 : index
    %c0_0 = arith.constant 0 : index
    %0 = vector.load %arg1[%c0, %c0_0] : memref<8x30xf32, #tpu.memory_space<vmem>>, vector<8x30xf32>
    %c0_1 = arith.constant 0 : index
    %c0_2 = arith.constant 0 : index
    %1 = vector.load %arg2[%c0_1, %c0_2] : memref<30x64xf32, #tpu.memory_space<vmem>>, vector<30x64xf32>
    %cst = arith.constant dense<0.000000e+00> : vector<8x64xf32>
    %2 = tpu.matmul %0, %1, %cst {dimension_numbers = #tpu.dot_dimension_numbers<[1], [0], [0], [1], [0, 0, 1, 1], [], []>} : vector<8x30xf32>, vector<30x64xf32>, vector<8x64xf32> -> vector<8x64xf32>
    %c0_3 = arith.constant 0 : index
    %c0_4 = arith.constant 0 : index
    %3 = vector.load %arg3[%c0_3, %c0_4] : memref<1x64xf32, #tpu.memory_space<vmem>>, vector<1x64xf32>
    %4 = vector.broadcast %3 : vector<1x64xf32> to vector<8x64xf32>
    %5 = arith.addf %2, %4 : vector<8x64xf32>
    %cst_5 = arith.constant 0.000000e+00 : f32
    %6 = vector.broadcast %cst_5 : f32 to vector<8x64xf32>
    %7 = arith.maximumf %5, %6 : vector<8x64xf32>
    %c0_6 = arith.constant 0 : index
    %c0_7 = arith.constant 0 : index
    %8 = vector.load %arg4[%c0_6, %c0_7] : memref<64x32xf32, #tpu.memory_space<vmem>>, vector<64x32xf32>
    %cst_8 = arith.constant dense<0.000000e+00> : vector<8x32xf32>
    %9 = tpu.matmul %7, %8, %cst_8 {dimension_numbers = #tpu.dot_dimension_numbers<[1], [0], [0], [1], [0, 0, 1, 1], [], []>} : vector<8x64xf32>, vector<64x32xf32>, vector<8x32xf32> -> vector<8x32xf32>
    %c0_9 = arith.constant 0 : index
    %c0_10 = arith.constant 0 : index
    %10 = vector.load %arg5[%c0_9, %c0_10] : memref<1x32xf32, #tpu.memory_space<vmem>>, vector<1x32xf32>
    %11 = vector.broadcast %10 : vector<1x32xf32> to vector<8x32xf32>
    %12 = arith.addf %9, %11 : vector<8x32xf32>
    %cst_11 = arith.constant 0.000000e+00 : f32
    %13 = vector.broadcast %cst_11 : f32 to vector<8x32xf32>
    %14 = arith.maximumf %12, %13 : vector<8x32xf32>
    %c0_12 = arith.constant 0 : index
    %c0_13 = arith.constant 0 : index
    %15 = vector.load %arg6[%c0_12, %c0_13] : memref<32x8xf32, #tpu.memory_space<vmem>>, vector<32x8xf32>
    %cst_14 = arith.constant dense<0.000000e+00> : vector<8x8xf32>
    %16 = tpu.matmul %14, %15, %cst_14 {dimension_numbers = #tpu.dot_dimension_numbers<[1], [0], [0], [1], [0, 0, 1, 1], [], []>} : vector<8x32xf32>, vector<32x8xf32>, vector<8x8xf32> -> vector<8x8xf32>
    %c0_15 = arith.constant 0 : index
    %c0_16 = arith.constant 0 : index
    %17 = vector.load %arg7[%c0_15, %c0_16] : memref<1x8xf32, #tpu.memory_space<vmem>>, vector<1x8xf32>
    %18 = vector.broadcast %17 : vector<1x8xf32> to vector<8x8xf32>
    %19 = arith.addf %16, %18 : vector<8x8xf32>
    %c0_17 = arith.constant 0 : index
    %c0_18 = arith.constant 0 : index
    %20 = vector.load %arg8[%c0_17, %c0_18] : memref<8x8xf32, #tpu.memory_space<vmem>>, vector<8x8xf32>
    tpu.vector_store %arg8[%c0_17, %c0_18], %19 {strides = array<i32>} : memref<8x8xf32, #tpu.memory_space<vmem>>, vector<8x8xf32>,
    return
  }
  func.func @transform_0(%arg0: i32) -> (i32, i32) {
    %c0_i32 = arith.constant 0 : i32
    %c0_i32_0 = arith.constant 0 : i32
    return %arg0, %c0_i32 : i32, i32
  }
  func.func @transform_1(%arg0: i32) -> (i32, i32) {
    %c0_i32 = arith.constant 0 : i32
    %c0_i32_0 = arith.constant 0 : i32
    %c0_i32_1 = arith.constant 0 : i32
    return %c0_i32, %c0_i32_0 : i32, i32
  }
  func.func @transform_2(%arg0: i32) -> (i32, i32) {
    %c0_i32 = arith.constant 0 : i32
    %c0_i32_0 = arith.constant 0 : i32
    %c0_i32_1 = arith.constant 0 : i32
    return %c0_i32, %c0_i32_0 : i32, i32
  }
  func.func @transform_3(%arg0: i32) -> (i32, i32) {
    %c0_i32 = arith.constant 0 : i32
    %c0_i32_0 = arith.constant 0 : i32
    %c0_i32_1 = arith.constant 0 : i32
    return %c0_i32, %c0_i32_0 : i32, i32
  }
  func.func @transform_4(%arg0: i32) -> (i32, i32) {
    %c0_i32 = arith.constant 0 : i32
    %c0_i32_0 = arith.constant 0 : i32
    %c0_i32_1 = arith.constant 0 : i32
    return %c0_i32, %c0_i32_0 : i32, i32
  }
  func.func @transform_5(%arg0: i32) -> (i32, i32) {
    %c0_i32 = arith.constant 0 : i32
    %c0_i32_0 = arith.constant 0 : i32
    %c0_i32_1 = arith.constant 0 : i32
    return %c0_i32, %c0_i32_0 : i32, i32
  }
  func.func @transform_6(%arg0: i32) -> (i32, i32) {
    %c0_i32 = arith.constant 0 : i32
    %c0_i32_0 = arith.constant 0 : i32
    %c0_i32_1 = arith.constant 0 : i32
    return %c0_i32, %c0_i32_0 : i32, i32
  }
  func.func @transform_7(%arg0: i32) -> (i32, i32) {
    %c0_i32 = arith.constant 0 : i32
    %c0_i32_0 = arith.constant 0 : i32
    return %arg0, %c0_i32 : i32, i32
  }
}

</mosaic_0001>

<bundles_post_ra>
// kernel: _bcw_dnn_call.1
= control target key start
LH: loop header
LB: loop body
LE: loop exit
PB: predicated region body
PF: predicated region fallthrough
CT: control target
= control target key end

     0   :  { %v394_v0 = vmov 0.0|0.0   ;;  %vm42_vm0 = vcmask 1045504   ;;  %vm395_vm1 = vmmov 0   ;;  %v396_v6 = vmov 0.0   ;;  %s504_s1 = inlined_call_operand.vmem [shape: f32[30,64], index: 1, kind: input, shape index: {}]   ;;  %s505_s3 = inlined_call_operand.vmem [shape: f32[64,32], index: 3, kind: input, shape index: {}]   ;;  %s506_s0 = inlined_call_operand.vmem [shape: f32[8,30], index: 0, kind: input, shape index: {}]   ;;  %s507_s5 = inlined_call_operand.vmem [shape: f32[32,8], index: 5, kind: input, shape index: {}]   ;;  %s508_s2 = inlined_call_operand.vmem [shape: f32[1,64], index: 2, kind: input, shape index: {}]   ;;  %s509_s4 = inlined_call_operand.vmem [shape: f32[1,32], index: 4, kind: input, shape index: {}]   ;;  %s510_s6 = inlined_call_operand.vmem [shape: f32[1,8], index: 6, kind: input, shape index: {}]   ;;  %s511_s7 = inlined_call_operand.vmem [shape: f32[8,8], index: 7, kind: output, shape index: {}]  }
   0x1   :  { %365 = vmatprep.subr.bf16.mxu0 %v394_v0  ;;  %v27_v1 = vld [vmem:[%s504_s1] sm:$0xff]  ;;  %v28_v2 = vld [vmem:[%s504_s1 + $0x8] sm:$0xff]  ;;  %v29_v3 = vld [vmem:[%s504_s1 + $0x10] sm:$0xff]  ;;  %372 = vmatprep.subr.bf16.mxu1 %v394_v0  ;;  %vm397_vm2 = vmmov 1   ;;  %vm38_vm4 = vcmask 244736   ;;  %vm132_vm5 = vcmask 523264  }
   0x2   :  { %v366_v4 = vpack.c.bf16 %v28_v2, %v27_v1  ;;  %v30_v5 = vld [vmem:[%s504_s1 + $0x18] sm:$0x3f]  ;;  %332 = vmatprep.mubr.msk.f32.mxu0 %vm395_vm1, %v396_v6  ;;  %351 = vmatprep.mubr.msk.f32.mxu1 %vm395_vm1, %v396_v6  ;;  %v117_v7 = vld [vmem:[%s505_s3] sm:$0xff]  ;;  %v118_v8 = vld [vmem:[%s505_s3 + $0x8] sm:$0xff]  ;;  %vm218_vm6 = vcmask 261120   ;;  %vm292_vm7 = vcmask 64512  }
   0x3   :  { %v119_v9 = vld [vmem:[%s505_s3 + $0x10] sm:$0xff]  ;;  %v369_v10 = vpack.c.bf16 %v30_v5, %v29_v3  ;;  %v373_v11 = vpack.c.bf16 %v118_v8, %v117_v7  ;;  %v120_v12 = vld [vmem:[%s505_s3 + $0x18] sm:$0xff]  ;;  %vm370_vm3 = vmpackc.low %vm42_vm0, %vm397_vm2 }
   0x4   :  { %367 = vmatpush3.bf16.msra.mxu0 %v366_v4  ;;  %v376_v13 = vpack.c.bf16 %v120_v12, %v119_v9  ;;  %v121_v14 = vld [vmem:[%s505_s3 + $0x20] sm:$0xff]  ;;  %v122_v15 = vld [vmem:[%s505_s3 + $0x28] sm:$0xff]  ;;  %v123_v18 = vld [vmem:[%s505_s3 + $0x30] sm:$0xff] }
   0x5   :  { %368 = vmatprep.subr.bf16.mxu0 %v394_v0  ;;  %374 = vmatpush3.bf16.msra.mxu1 %v373_v11  ;;  %v26_v16 = vld [vmem:[%s506_s0] sm:$0xff]  ;;  %v379_v17 = vpack.c.bf16 %v122_v15, %v121_v14  ;;  %v124_v19 = vld [vmem:[%s505_s3 + $0x38] sm:$0xff]  ;;  %v208_v22 = vld [vmem:[%s507_s5 + $0x8] sm:$0xff] }
   0x6   :  { %375 = vmatprep.subr.bf16.mxu1 %v394_v0  ;;  %v382_v20 = vpack.c.bf16 %v124_v19, %v123_v18  ;;  %v207_v21 = vld [vmem:[%s507_s5] sm:$0xff]  ;;  %v209_v29 = vld [vmem:[%s507_s5 + $0x10] sm:$0xff]  ;;  %v210_v30 = vld [vmem:[%s507_s5 + $0x18] sm:$0xff] }
   0x7   :  { %v385_v23 = vpack.c.bf16 %v208_v22, %v207_v21  ;;  %v298_v24 = vld [vmem:[%s508_s2] ss:$0 sm:$0xff]  ;;  %v388_v31 = vpack.c.bf16 %v210_v30, %v209_v29 }
   0x8   :  { %371 = vmatpush3.bf16.msk.msra.mxu0 %vm370_vm3, %v369_v10  ;;  %v301_v32 = vld [vmem:[%s509_s4] ss:$0 sm:$0xff] }
   0x9   :  { %384 = vmatprep.subr.bf16.mxu0 %v394_v0  ;;  %377 = vmatpush3.bf16.msra.mxu1 %v376_v13  ;;  %v303_v37 = vld [vmem:[%s510_s6] ss:$0 sm:$0xff] }
   0xa   :  { %378 = vmatprep.subr.bf16.mxu1 %v394_v0 }
   0xb   :  { %333 = vmatmul.mubr.msk.f32.vlgmr.msra.gmra.mrb[0].mxu0 %vm38_vm4, %v26_v16 }
   0xc   :  { %362 = vmatprep.mubr.msk.f32.mxu0 %vm395_vm1, %v396_v6  ;;  %386 = vmatpush3.bf16.msra.mxu0 %v385_v23 }
   0xd   :  { %380 = vmatpush3.bf16.msra.mxu1 %v379_v17  ;;  %387 = vmatprep.subr.bf16.mxu0 %v394_v0 }
   0xe   :  { %381 = vmatprep.subr.bf16.mxu1 %v394_v0 }
  0x10   :  { %389 = vmatpush3.bf16.msra.mxu0 %v388_v31 }
  0x11   :  { %383 = vmatpush3.bf16.msra.mxu1 %v382_v20 }
  0xde   :  { %v112_v25 = vpop.f32.mrb[0].mxu0 }
  0xdf   :  { %v113_v26 = vadd.f32 %v298_v24, %v112_v25  ;;  %v334_v27 = vpop.f32.mrb[1].mxu0 }
  0xe1   :  { %v116_v28 = vmax.f32 %v113_v26, 0.0 }
  0xe3   :  { %352 = vmatmul.mubr.msk.f32.vlgmr.msra.gmra.mrb[0].mxu1 %vm132_vm5, %v116_v28 }
 0x1b6   :  { %v202_v33 = vpop.f32.mrb[0].mxu1 }
 0x1b7   :  { %v203_v34 = vadd.f32 %v301_v32, %v202_v33  ;;  %v353_v35 = vpop.f32.mrb[1].mxu1 }
 0x1b9   :  { %v206_v36 = vmax.f32 %v203_v34, 0.0 }
 0x1bb   :  { %363 = vmatmul.mubr.msk.f32.vlgmr.msra.gmra.mrb[2].mxu0 %vm218_vm6, %v206_v36 }
 0x28e   :  { %v288_v38 = vpop.f32.mrb[2].mxu0 }
 0x28f   :  { %v289_v39 = vadd.f32 %v303_v37, %v288_v38  ;;  %v364_v40 = vpop.f32.mrb[3].mxu0 }
 0x291   :  { %293 = vst.msk [vmem:[%s511_s7] sm:$0xff] %vm292_vm7, %v289_v39 }

</bundles_post_ra>
